<compile_context>
chip_gen: v7x
topology: tpu7x:2x2x1
jax: 0.10.0
libtpu: 0.0.40
codegen_flags: <defaults>
</compile_context>

<pallas_src>
import functools

import jax
import jax.numpy as jnp
from jax.experimental import pallas as pl
from jax.experimental.pallas import tpu as pltpu


def _round_up(n, m):
    return -(-n // m) * m


def _sublane_multiple(dtype):
    # Min row multiple per vreg sublane group: 8 (32-bit), 16 (16-bit), 32 (8-bit).
    return {4: 8, 2: 16, 1: 32}.get(jnp.dtype(dtype).itemsize, 8)


def _block_spec(shape, index_map, single_buffer=False):
    """BlockSpec; optionally single-buffered (for blocks whose index is constant)."""
    if single_buffer:
        try:
            return pl.BlockSpec(shape, index_map, pipeline_mode=pl.Buffered(1))
        except TypeError:   # older jax without pipeline_mode kwarg
            pass
    return pl.BlockSpec(shape, index_map)


# --------------------------------------------------------------------------
# Kernel: one fused affine tile  y = x @ W + b
# --------------------------------------------------------------------------
def _fused_affine_kernel(x_ref, w_ref, b_ref, o_ref):
    # x_ref: [TB, D], w_ref: [D, TN], b_ref: [1, TN] (f32), o_ref: [TB, TN]
    x = x_ref[...]
    w = w_ref[...]
    if w.dtype == jnp.bfloat16 and x.dtype != jnp.bfloat16:
        x = x.astype(jnp.bfloat16)          # feed the bf16-native MXU (v6e/v7x)
    y = jnp.dot(x, w, preferred_element_type=jnp.float32)
    o_ref[...] = (y + b_ref[...].astype(jnp.float32)).astype(o_ref.dtype)


# --------------------------------------------------------------------------
# One-time parameter fusion (call once per parameter set, outside the hot loop)
# --------------------------------------------------------------------------
def fuse_params(params, *, lane_multiple=128, weight_dtype=None):
    """Collapse the activation-free 3-layer chain into a single (W, b).

    Lane-pads the fused output dim to a multiple of `lane_multiple` so kernel
    stores are unmasked / lane-dense.  Fusion itself is done in f32.  Returns
    (W, b, out_dim) where out_dim is a *Python int* (static).
    """
    f32 = jnp.float32
    w1, b1 = params["w1"].astype(f32), params["b1"].astype(f32)
    w2, b2 = params["w2"].astype(f32), params["b2"].astype(f32)
    w3, b3 = params["w3"].astype(f32), params["b3"].astype(f32)

    W = (w1 @ w2) @ w3                              # [D, Dout]
    b = ((b1 @ w2) @ w3) + (b2 @ w3) + b3           # [1, Dout]

    out_dim = int(W.shape[1])
    pad = (-out_dim) % lane_multiple
    if pad:
        W = jnp.pad(W, ((0, 0), (0, pad)))
        b = jnp.pad(b, ((0, 0), (0, pad)))

    if weight_dtype is None:
        weight_dtype = params["w1"].dtype           # e.g. bf16 to halve HBM/VMEM bytes
    return W.astype(weight_dtype), b.astype(f32), out_dim


# --------------------------------------------------------------------------
# Forward wrapper
# --------------------------------------------------------------------------
def linear_transform_forward(x, W, b, *, out_dim, return_transformed=True,
                             block_rows=512, max_cols=2048, force_pallas=False):
    """Pallas implementation of LinearTransformModel.forward.

    x: [B, D]; W: [D, Dp] (lane-padded); b: [1, Dp] (f32); out_dim: Python int.
    """
    if not return_transformed:
        return x

    B, D = x.shape
    Dw, Dp = W.shape
    assert Dw == D and b.shape == (1, Dp)

    # Tiny-problem fallback: fixed pallas_call/DMA overhead dominates.
    if not force_pallas and B * max(D, Dp) < (1 << 17):
        y = x.astype(jnp.float32) @ W.astype(jnp.float32) + b
        return y[:, :out_dim].astype(x.dtype)

    # --- tile selection -----------------------------------------------------
    subl = _sublane_multiple(x.dtype)
    tb = min(_round_up(block_rows, subl), _round_up(B, subl))
    # Prefer >=2 batch grid steps when B allows, so v7x's 2 TCs both get work.
    if B > subl:
        tb = min(tb, _round_up(-(-B // 2), subl))
    tn = min(Dp, _round_up(max_cols, 128))

    grid = (pl.cdiv(B, tb), pl.cdiv(Dp, tn))
    n_steps = grid[1]
    w_single = (n_steps == 1)       # constant block index -> one buffer suffices

    # --- explicit VMEM budget -------------------------------------------------
    x_bytes = jnp.dtype(x.dtype).itemsize
    w_bytes = jnp.dtype(W.dtype).itemsize
    w_bufs = 1 if w_single else 2
    vmem_bytes = (w_bufs * D * tn * w_bytes          # W buffers
                  + w_bufs * tn * 4                  # bias buffers (f32)
                  + 2 * tb * D * x_bytes             # double-buffered x tile
                  + 2 * tb * tn * x_bytes            # double-buffered out tile
                  + (2 << 20))                       # headroom
    vmem_limit = int(min(max(vmem_bytes, 16 << 20), 64 << 20))

    cost = pl.CostEstimate(
        flops=2 * B * D * Dp,
        transcendentals=0,
        bytes_accessed=(B * D * x_bytes + grid[0] * D * Dp * w_bytes
                        + Dp * 4 + B * Dp * x_bytes),
    )

    out = pl.pallas_call(
        _fused_affine_kernel,
        out_shape=jax.ShapeDtypeStruct((B, Dp), x.dtype),
        grid=grid,
        in_specs=[
            pl.BlockSpec((tb, D), lambda i, j: (i, 0)),               # streamed x
            _block_spec((D, tn), lambda i, j: (0, j), w_single),      # weight tile
            _block_spec((1, tn), lambda i, j: (0, j), w_single),      # bias tile
        ],
        out_specs=pl.BlockSpec((tb, tn), lambda i, j: (i, j)),
        compiler_params=pltpu.CompilerParams(
            dimension_semantics=("parallel", "parallel"),
            vmem_limit_bytes=vmem_limit),
        cost_estimate=cost,
    )(x, W, b)

    # Strip lane padding once, outside the kernel (out_dim is STATIC).
    return out[:, :out_dim]
    # TODO(synk): add a K (D) grid axis with an f32 VMEM accumulator for
    # D >~ 8192, so the (tb x D) x tile does not blow VMEM for very wide inputs.


# --------------------------------------------------------------------------
# Init + pure-JAX reference (layer-by-layer, mirrors PyTorch nn.Linear)
# --------------------------------------------------------------------------
def init_params(key, input_dim, output_dim, dtype=jnp.float32):
    """nn.Linear default init (uniform +/- 1/sqrt(fan_in)).

    Weights stored transposed ([in, out]) so math is x @ W; biases [1, out].
    """
    ks = jax.random.split(key, 6)

    def lin(kw, kb, fan_in, fan_out):
        bound = 1.0 / jnp.sqrt(fan_in)
        w = jax.random.uniform(kw, (fan_in, fan_out), dtype, -bound, bound)
        bb = jax.random.uniform(kb, (1, fan_out), dtype, -bound, bound)
        return w, bb

    w1, b1 = lin(ks[0], ks[1], input_dim, input_dim)
    w2, b2 = lin(ks[2], ks[3], input_dim, input_dim)
    w3, b3 = lin(ks[4], ks[5], input_dim, output_dim)
    return dict(w1=w1, b1=b1, w2=w2, b2=b2, w3=w3, b3=b3)


def reference_forward(x, params, *, return_transformed=True):
    if not return_transformed:
        return x
    h = x @ params["w1"] + params["b1"]
    h = h @ params["w2"] + params["b2"]
    return h @ params["w3"] + params["b3"]


if __name__ == "__main__":
    key = jax.random.PRNGKey(0)
    k_x, k_p = jax.random.split(key)

    batch, input_dim, output_dim = 8, 32, 16
    x = jax.random.normal(k_x, (batch, input_dim), jnp.float32)
    params = init_params(k_p, input_dim, output_dim)

    # Fuse (and lane-pad) the 3-layer affine once, outside the hot path.
    W, b, out_dim = fuse_params(params)     # out_dim is a static Python int
    W, b = jax.block_until_ready(W), jax.block_until_ready(b)

    # Pallas hot path (force_pallas=True so the kernel is exercised even at
    # this tiny demo size; out_dim is bound as a static constant via partial).
    fwd = jax.jit(functools.partial(linear_transform_forward,
                                    out_dim=out_dim,
                                    return_transformed=True,
                                    force_pallas=True))
    out = fwd(x, W, b)
    jax.block_until_ready(out)

    ref = reference_forward(x, params, return_transformed=True)
    assert out.shape == (batch, output_dim), out.shape
    assert jnp.allclose(out, ref, atol=1e-4, rtol=1e-4), (
        float(jnp.max(jnp.abs(out - ref))))

    # Tiny-size XLA fallback path (no force_pallas) must match too.
    out_fb = linear_transform_forward(x, W, b, out_dim=out_dim,
                                      return_transformed=True)
    jax.block_until_ready(out_fb)
    assert jnp.allclose(out_fb, ref, atol=1e-4, rtol=1e-4)

    # return_transformed=False path is identity (no kernel needed).
    ident = linear_transform_forward(x, W, b, out_dim=out_dim,
                                     return_transformed=False)
    assert jnp.array_equal(ident, x)

    print("KERNEL_OK")
</pallas_src>

<mosaic_0001>
module attributes {stable_mosaic.version = 11 : i64} {
  func.func @_fused_affine_kernel(%arg0: i32, %arg1: i32, %arg2: memref<8x32xf32, #tpu.memory_space<vmem>>, %arg3: memref<32x128xf32, #tpu.memory_space<vmem>>, %arg4: memref<1x128xf32, #tpu.memory_space<vmem>>, %arg5: memref<8x128xf32, #tpu.memory_space<vmem>>) attributes {dimension_semantics = [#tpu.dimension_semantics<parallel>, #tpu.dimension_semantics<parallel>], iteration_bounds = array<i64: 1, 1>, scalar_prefetch = 0 : i64, scratch_operands = 0 : i64, tpu.core_type = #tpu.core_type<tc>, window_params = [{transform_indices = @transform_0, window_bounds = array<i64: 8, 32>}, {pipeline_mode = #tpu.pipeline_mode<synchronous>, transform_indices = @transform_1, window_bounds = array<i64: 32, 128>}, {pipeline_mode = #tpu.pipeline_mode<synchronous>, transform_indices = @transform_2, window_bounds = array<i64: 1, 128>}, {transform_indices = @transform_3, window_bounds = array<i64: 8, 128>}]} {
    %c0 = arith.constant 0 : index
    %c0_0 = arith.constant 0 : index
    %0 = vector.load %arg2[%c0, %c0_0] : memref<8x32xf32, #tpu.memory_space<vmem>>, vector<8x32xf32>
    %c0_1 = arith.constant 0 : index
    %c0_2 = arith.constant 0 : index
    %1 = vector.load %arg3[%c0_1, %c0_2] : memref<32x128xf32, #tpu.memory_space<vmem>>, vector<32x128xf32>
    %cst = arith.constant dense<0.000000e+00> : vector<8x128xf32>
    %2 = tpu.matmul %0, %1, %cst {dimension_numbers = #tpu.dot_dimension_numbers<[1], [0], [0], [1], [0, 0, 1, 1], [], []>} : vector<8x32xf32>, vector<32x128xf32>, vector<8x128xf32> -> vector<8x128xf32>
    %c0_3 = arith.constant 0 : index
    %c0_4 = arith.constant 0 : index
    %3 = vector.load %arg4[%c0_3, %c0_4] : memref<1x128xf32, #tpu.memory_space<vmem>>, vector<1x128xf32>
    %4 = vector.broadcast %3 : vector<1x128xf32> to vector<8x128xf32>
    %5 = arith.addf %2, %4 : vector<8x128xf32>
    %c0_5 = arith.constant 0 : index
    %c0_6 = arith.constant 0 : index
    %6 = vector.load %arg5[%c0_5, %c0_6] : memref<8x128xf32, #tpu.memory_space<vmem>>, vector<8x128xf32>
    tpu.vector_store %arg5[%c0_5, %c0_6], %5 {strides = array<i32>} : memref<8x128xf32, #tpu.memory_space<vmem>>, vector<8x128xf32>,
    return
  }
  func.func @transform_0(%arg0: i32, %arg1: i32) -> (i32, i32) {
    %c0_i32 = arith.constant 0 : i32
    %c0_i32_0 = arith.constant 0 : i32
    return %arg0, %c0_i32 : i32, i32
  }
  func.func @transform_1(%arg0: i32, %arg1: i32) -> (i32, i32) {
    %c0_i32 = arith.constant 0 : i32
    %c0_i32_0 = arith.constant 0 : i32
    return %c0_i32, %arg1 : i32, i32
  }
  func.func @transform_2(%arg0: i32, %arg1: i32) -> (i32, i32) {
    %c0_i32 = arith.constant 0 : i32
    %c0_i32_0 = arith.constant 0 : i32
    return %c0_i32, %arg1 : i32, i32
  }
  func.func @transform_3(%arg0: i32, %arg1: i32) -> (i32, i32) {
    %c0_i32 = arith.constant 0 : i32
    return %arg0, %arg1 : i32, i32
  }
}

</mosaic_0001>

<bundles_post_ra>
// kernel: linear_transform_forward.1
= control target key start
LH: loop header
LB: loop body
LE: loop exit
PB: predicated region body
PF: predicated region fallthrough
CT: control target
= control target key end

     0   :  { %8 = vsyncpa [#allocation3], 0  ;;  %s322_s0 = inlined_call_operand.hbm [shape: f32[8,32], index: 0, kind: input, shape index: {}]   ;;  %s323_s1 = inlined_call_operand.hbm [shape: f32[32,128], index: 1, kind: input, shape index: {}]   ;;  %s324_s2 = inlined_call_operand.vmem [shape: f32[1,128], index: 2, kind: input, shape index: {}]   ;;  %s325_s3 = inlined_call_operand.hbm [shape: f32[8,128], index: 3, kind: output, shape index: {}]  }
   0x1   :  { %9 = vsyncpa [#allocation6], 0 }
   0x2   :  { %10 = vsyncpa [#allocation4], 0  ;;  %s248_s12 = smov [#allocation2]   ;;  %s249_s14 = smov [#allocation5]  }
   0x3   :  { %s17_s13 = sshll.u32 %s248_s12, 4  ;;  %s26_s15 = sshll.u32 %s249_s14, 4  ;;  %s18_s13 = int_to_ptr.vmem [resolvable:$true] %s17_s13  ;;  %s276_s15 = int_to_ptr.vmem [resolvable:$true] %s26_s15 }
   0x4   :  { %s176_s18 = scalar_lea.hbm %s322_s0, 128 }
   0x5   :  { %p177_p0 = scmp.ne.s32.totalorder %s322_s0, %s176_s18  ;;  %p180_p1 = scmp.lt.u32.totalorder %s176_s18, %s322_s0 }
   0x7   :  { %p182_p2 = pnand %p180_p1, %p177_p0 }
   0x9   :  { %185 = shalt.err (!%p182_p2)
}
   0xa   :  { %s186_s23 = scalar_lea.vmem %s18_s13, 128  ;;  %p191_p4 = scmp.lt.s32.totalorder %s18_s13, %s18_s13 }
   0xb   :  { %p187_p3 = scmp.ne.s32.totalorder %s18_s13, %s186_s23  ;;  %p192_p5 = scmp.lt.s32.totalorder %s186_s23, %s186_s23 }
   0xd   :  { %p193_p6 = por %p192_p5, %p191_p4 }
   0xf   :  { %p194_p7 = pnand %p193_p6, %p187_p3 }
  0x11   :  { %197 = shalt.err (!%p194_p7)
}
  0x12   :  { %20 = dma.hbm_to_vmem [thread:$0]  %s322_s0, 128, %s18_s13, [#allocation3]  }
  0x13   :  { %s198_s28 = scalar_lea.hbm %s323_s1, 512 }
  0x14   :  { %p199_p8 = scmp.ne.s32.totalorder %s323_s1, %s198_s28  ;;  %p202_p9 = scmp.lt.u32.totalorder %s198_s28, %s323_s1 }
  0x16   :  { %p204_p10 = pnand %p202_p9, %p199_p8 }
  0x18   :  { %207 = shalt.err (!%p204_p10)
}
  0x19   :  { %s208_s6 = scalar_lea.vmem %s276_s15, 512  ;;  %p213_p12 = scmp.lt.s32.totalorder %s276_s15, %s276_s15 }
  0x1a   :  { %p209_p11 = scmp.ne.s32.totalorder %s276_s15, %s208_s6  ;;  %p214_p13 = scmp.lt.s32.totalorder %s208_s6, %s208_s6 }
  0x1c   :  { %p215_p0 = por %p214_p13, %p213_p12 }
  0x1e   :  { %p216_p1 = pnand %p215_p0, %p209_p11 }
  0x20   :  { %219 = shalt.err (!%p216_p1)
}
  0x21   :  { %s250_s0 = smov 128   ;;  %s251_s7 = smov 8  }
  0x22   :  { %32 = dma.hbm_to_vmem [thread:$0]  %s323_s1, 512, %s276_s15, [#allocation6], %s250_s0, %s250_s0, %s251_s7  }
  0x23   :  { %242 = dma.done.wait [#allocation3], 128  }
  0x24   :  { %243 = vsyncadd [#allocation3], 4294967168 }
  0x25   :  { %244 = dma.done.wait [#allocation6], 512  }
  0x26   :  { %245 = vsyncadd [#allocation6], 4294966784  ;;  %v252_v0 = vmov 0.0|0.0   ;;  %vm253_vm0 = vmmov 0   ;;  %v254_v1 = vmov 0.0   ;;  %v42_v2 = vld [vmem:[#allocation5] sm:$0xff] }
  0x27   :  { %162 = vmatprep.subr.bf16.mxu0 %v252_v0  ;;  %159 = vmatprep.mubr.msk.f32.mxu0 %vm253_vm0, %v254_v1  ;;  %v43_v3 = vld [vmem:[#allocation5 + $0x8] sm:$0xff]  ;;  %v44_v4 = vld [vmem:[#allocation5 + $0x10] sm:$0xff]  ;;  %v45_v6 = vld [vmem:[#allocation5 + $0x18] sm:$0xff]  ;;  %vm53_vm1 = vcmask 261120   ;;  %s255_s11 = smov [#allocation7]  }
  0x28   :  { %v163_v5 = vpack.c.bf16 %v43_v3, %v42_v2  ;;  %v166_v7 = vpack.c.bf16 %v45_v6, %v44_v4  ;;  %v41_v8 = vld [vmem:[#allocation2] sm:$0xff]  ;;  %s134_s12 = sshll.u32 %s255_s11, 4  ;;  %s135_s12 = int_to_ptr.vmem [resolvable:$true] %s134_s12 }
  0x29   :  { %v144_v9 = vld [vmem:[%s324_s2] ss:$0 sm:$0xff]  ;;  %s220_s13 = scalar_lea.vmem %s135_s12, 128  ;;  %p225_p3 = scmp.lt.s32.totalorder %s135_s12, %s135_s12 }
  0x2a   :  { %164 = vmatpush3.bf16.msra.mxu0 %v163_v5  ;;  %p221_p2 = scmp.ne.s32.totalorder %s135_s12, %s220_s13  ;;  %p226_p4 = scmp.lt.s32.totalorder %s220_s13, %s220_s13 }
  0x2b   :  { %165 = vmatprep.subr.bf16.mxu0 %v252_v0 }
  0x2c   :  { %p227_p5 = por %p226_p4, %p225_p3 }
  0x2e   :  { %167 = vmatpush3.bf16.msra.mxu0 %v166_v7  ;;  %p228_p6 = pnand %p227_p5, %p221_p2 }
  0x31   :  { %160 = vmatmul.mubr.msk.f32.vlgmr.msra.gmra.mrb[0].mxu0 %vm53_vm1, %v41_v8 }
 0x104   :  { %v123_v10 = vpop.f32.mrb[0].mxu0 }
 0x105   :  { %v124_v11 = vadd.f32 %v144_v9, %v123_v10  ;;  %v161_v12 = vpop.f32.mrb[1].mxu0 }
 0x107   :  { %127 = vst [vmem:[#allocation7] sm:$0xff] %v124_v11 }
 0x108   :  { %231 = shalt.err (!%p228_p6)
}
 0x109   :  { %s232_s16 = scalar_lea.hbm %s325_s3, 128 }
 0x10a   :  { %p233_p7 = scmp.ne.s32.totalorder %s325_s3, %s232_s16  ;;  %p236_p8 = scmp.lt.u32.totalorder %s232_s16, %s325_s3 }
 0x10c   :  { %p238_p9 = pnand %p236_p8, %p233_p7 }
 0x10e   :  { %241 = shalt.err (!%p238_p9)
}
 0x10f   :  { %137 = dma.vmem_to_hbm [thread:$0]  %s135_s12, 128, %s325_s3, [#allocation4]  }
 0x110   :  { %246 = dma.done.wait [#allocation4], 128  }
 0x111   :  { %247 = vsyncadd [#allocation4], 4294967168 }
 0x112   :  { %141 = vsyncpa [#allocation3], 1 }
 0x113   :  { %142 = vsyncpa [#allocation6], 1 }
 0x114   :  { %143 = vsyncpa [#allocation4], 1 }

</bundles_post_ra>
